<compile_context>
chip_gen: v5e
topology: v5e:2x2
jax: 0.10.0
libtpu: 0.0.40
codegen_flags: <defaults>
</compile_context>

<pallas_src>
import jax
import jax.numpy as jnp
from jax.experimental import pallas as pl
from jax.experimental.pallas import tpu as pltpu


def _make_header_kernel(W):
    """Builds the kernel closed over the (static) image width W."""

    def kernel(x_ref, dw_ref, mask_ref, w1b_ref, b2_ref, w2b_ref, bias_ref, o_ref):
        # x_ref    : (N*C, HW)     f32   input, batch folded into sublanes, HW on lanes
        # dw_ref   : (N*C, 9)      f32   depthwise 3x3 weights (BN1 folded), tiled per batch
        # mask_ref : (9, HW)       f32   per-tap border-validity masks (implements pad=1)
        # w1b_ref  : (N*Hd, N*C)   bf16  block-diag 1x1 conv C->Hd (BN2 scale folded)
        # b2_ref   : (N*Hd, 1)     f32   folded BN shift: (b1 @ w1) * s2 + b2, tiled
        # w2b_ref  : (N*Co, N*Hd)  bf16  block-diag 1x1 conv Hd->Co
        # bias_ref : (N*Co, 1)     f32   final conv bias, tiled
        # o_ref    : (N*Co, HW)    f32
        HW = x_ref.shape[1]

        x = x_ref[...]              # (R, HW), R = N*C
        dw = dw_ref[...]            # (R, 9)
        masks = mask_ref[...]       # (9, HW)

        # Depthwise 3x3 conv (pad=1) as 9 lane-rolled multiply-adds.
        # Rolls use the XLU slot; masks zero out wrapped border contributions
        # (which also prevents any bleed between adjacent images on the lane axis).
        acc = x * dw[:, 4:5]                                   # center tap (0, 0)
        for oi in (-1, 0, 1):
            for oj in (-1, 0, 1):
                if oi == 0 and oj == 0:
                    continue
                t = (oi + 1) * 3 + (oj + 1)
                shift = oi * W + oj                            # static python int
                xs = pltpu.roll(x, (-shift) % HW, axis=1)      # xs[p] = x[p + shift]
                acc = acc + (xs * masks[t:t + 1, :]) * dw[:, t:t + 1]

        # 1x1 conv C -> Hd for the whole batch: block-diag MXU matmul, lanes = HW.
        z = jnp.dot(w1b_ref[...], acc.astype(jnp.bfloat16),
                    preferred_element_type=jnp.float32)        # (N*Hd, HW)
        z = jnp.clip(z + b2_ref[...], 0.0, 6.0)                # folded BN shift + ReLU6

        # 1x1 conv Hd -> Co (+bias) for the whole batch.
        out = jnp.dot(w2b_ref[...], z.astype(jnp.bfloat16),
                      preferred_element_type=jnp.float32)      # (N*Co, HW)
        out = out + bias_ref[...]

        # Sigmoid via EUP exp + approximate reciprocal (numerically stable form).
        e = jnp.exp(-jnp.abs(out))
        num = jnp.where(out >= 0.0, 1.0, e)
        out = num * pl.reciprocal(1.0 + e, approx=True)

        o_ref[...] = out.astype(o_ref.dtype)

    return kernel


def fold_header_params(raw_params, eps=1e-5):
    """Fold inference-form BatchNorm into the conv weights and lay out / cast the
    parameters for the channel-major kernel (bf16 MXU weights)."""
    dw, (g1, be1, m1, v1), w1, (g2, be2, m2, v2), w2, bias = raw_params
    C = dw.shape[0]

    s1 = g1 / jnp.sqrt(v1 + eps)                 # (C,)
    b1 = be1 - m1 * s1                           # (C,)
    s2 = g2 / jnp.sqrt(v2 + eps)                 # (Hd,)
    b2 = be2 - m2 * s2                           # (Hd,)

    dw_f = (dw * s1[:, None, None]).reshape(C, 9).astype(jnp.float32)   # (C, 9)
    w1t = (w1 * s2[None, :]).T.astype(jnp.bfloat16)                     # (Hd, C)
    b2c = ((b1 @ w1) * s2 + b2)[:, None].astype(jnp.float32)            # (Hd, 1)
    w2t = w2.T.astype(jnp.bfloat16)                                     # (Co, Hd)
    biasc = bias[:, None].astype(jnp.float32)                           # (Co, 1)
    return dw_f, w1t, b2c, w2t, biasc


def _tap_masks(H, W):
    """(9, H*W) f32 validity masks for the 3x3, pad=1 taps in flattened layout."""
    p = jnp.arange(H * W, dtype=jnp.int32)
    i, j = p // W, p % W
    masks = []
    for oi in (-1, 0, 1):
        for oj in (-1, 0, 1):
            ok = (i + oi >= 0) & (i + oi < H) & (j + oj >= 0) & (j + oj < W)
            masks.append(ok.astype(jnp.float32))
    return jnp.stack(masks, axis=0)


def header_forward(x_nchw, raw_params):
    """Header forward pass. Input / output are NCHW like the PyTorch module."""
    N, C, H, W = x_nchw.shape
    dw_f, w1t, b2c, w2t, biasc = fold_header_params(raw_params)
    Hd, Co = w1t.shape[0], w2t.shape[0]
    HW = H * W

    # NCHW -> (N*C, H*W) is a free reshape (array is contiguous channel-major).
    x_flat = x_nchw.astype(jnp.float32).reshape(N * C, HW)
    masks = _tap_masks(H, W)

    # Batch-fold the parameters: tile per-channel vectors over N, and build
    # block-diagonal kron(I_N, W^T) matrices so both 1x1 convs cover the whole
    # batch with a single MXU matmul each.
    eye_b = jnp.eye(N, dtype=jnp.bfloat16)
    dw_b = jnp.tile(dw_f, (N, 1))                       # (N*C, 9)
    w1b = jnp.kron(eye_b, w1t)                          # (N*Hd, N*C) bf16
    b2b = jnp.tile(b2c, (N, 1))                         # (N*Hd, 1)
    w2b = jnp.kron(eye_b, w2t)                          # (N*Co, N*Hd) bf16
    biasb = jnp.tile(biasc, (N, 1))                     # (N*Co, 1)

    flops = 2 * HW * (9 * N * C + (N * Hd) * (N * C) + (N * Co) * (N * Hd))
    bytes_accessed = (x_flat.size * 4 + N * Co * HW * 4 + dw_b.size * 4 +
                      masks.size * 4 + w1b.size * 2 + w2b.size * 2 +
                      b2b.size * 4 + biasb.size * 4)
    cost = pl.CostEstimate(flops=flops, transcendentals=N * Co * HW,
                           bytes_accessed=bytes_accessed)

    out_flat = pl.pallas_call(
        _make_header_kernel(W),
        out_shape=jax.ShapeDtypeStruct((N * Co, HW), jnp.float32),
        grid_spec=pltpu.PrefetchScalarGridSpec(
            num_scalar_prefetch=0,
            grid=(1,),
            in_specs=[
                pl.BlockSpec((N * C, HW), lambda i: (0, 0)),
                pl.BlockSpec((N * C, 9), lambda i: (0, 0)),
                pl.BlockSpec((9, HW), lambda i: (0, 0)),
                pl.BlockSpec((N * Hd, N * C), lambda i: (0, 0)),
                pl.BlockSpec((N * Hd, 1), lambda i: (0, 0)),
                pl.BlockSpec((N * Co, N * Hd), lambda i: (0, 0)),
                pl.BlockSpec((N * Co, 1), lambda i: (0, 0)),
            ],
            out_specs=pl.BlockSpec((N * Co, HW), lambda i: (0, 0)),
        ),
        compiler_params=pltpu.CompilerParams(
            dimension_semantics=("arbitrary",),
        ),
        cost_estimate=cost,
    )(x_flat, dw_b, masks, w1b, b2b, w2b, biasb)

    # (N*Co, H*W) -> NCHW is again a free reshape; output is already lane-dense.
    return out_flat.reshape(N, Co, H, W)


def init_header_params(key, in_channel, out_channel, expand=4):
    """Synthetic parameters mirroring the PyTorch module's initialization
    (kaiming-normal fan_out convs, zero bias, default BatchNorm stats)."""
    hidden = in_channel * expand
    k1, k2, k3 = jax.random.split(key, 3)

    # Depthwise 3x3, torch weight (C,1,3,3): fan_out = C*9.
    dw = jax.random.normal(k1, (in_channel, 3, 3), jnp.float32) * (2.0 / (9.0 * in_channel)) ** 0.5
    bn1 = (jnp.ones((in_channel,), jnp.float32), jnp.zeros((in_channel,), jnp.float32),
           jnp.zeros((in_channel,), jnp.float32), jnp.ones((in_channel,), jnp.float32))

    # 1x1 conv C->hidden, torch (hidden, C, 1, 1): fan_out = hidden.  Stored (C, hidden).
    w1 = jax.random.normal(k2, (in_channel, hidden), jnp.float32) * (2.0 / hidden) ** 0.5
    bn2 = (jnp.ones((hidden,), jnp.float32), jnp.zeros((hidden,), jnp.float32),
           jnp.zeros((hidden,), jnp.float32), jnp.ones((hidden,), jnp.float32))

    # 1x1 conv hidden->out (bias), torch (out, hidden, 1, 1): fan_out = out.  Stored (hidden, out).
    w2 = jax.random.normal(k3, (hidden, out_channel), jnp.float32) * (2.0 / out_channel) ** 0.5
    bias = jnp.zeros((out_channel,), jnp.float32)

    return (dw, bn1, w1, bn2, w2, bias)


def _reference_forward(x_nchw, raw_params, eps=1e-5):
    """Pure-JAX f32 reference of the original (unfolded) module math."""
    dw, (g1, be1, m1, v1), w1, (g2, be2, m2, v2), w2, bias = raw_params
    x = x_nchw.astype(jnp.float32)
    N, C, H, W = x.shape
    xp = jnp.pad(x, ((0, 0), (0, 0), (1, 1), (1, 1)))
    acc = jnp.zeros_like(x)
    for di in range(3):
        for dj in range(3):
            acc = acc + xp[:, :, di:di + H, dj:dj + W] * dw[None, :, di, dj, None, None]
    y = ((acc - m1[None, :, None, None]) / jnp.sqrt(v1 + eps)[None, :, None, None]
         * g1[None, :, None, None] + be1[None, :, None, None])
    z = jnp.einsum("nchw,cd->ndhw", y, w1)
    z = ((z - m2[None, :, None, None]) / jnp.sqrt(v2 + eps)[None, :, None, None]
         * g2[None, :, None, None] + be2[None, :, None, None])
    z = jnp.clip(z, 0.0, 6.0)
    out = jnp.einsum("ndhw,do->nohw", z, w2) + bias[None, :, None, None]
    return jax.nn.sigmoid(out)


if __name__ == "__main__":
    # Small shapes: batch=2, in_channels=4, spatial=16x16, out_channels=8.
    N, C_in, H, W = 2, 4, 16, 16
    C_out, expand = 8, 4

    key = jax.random.PRNGKey(0)
    kx, kp = jax.random.split(key)
    x = jax.random.normal(kx, (N, C_in, H, W), jnp.float32)
    params = init_header_params(kp, C_in, C_out, expand)

    out = jax.block_until_ready(header_forward(x, params))
    ref = _reference_forward(x, params)

    assert out.shape == (N, C_out, H, W)
    # bf16 MXU operands + approximate reciprocal in the sigmoid => relaxed tolerance.
    max_err = float(jnp.max(jnp.abs(out - ref)))
    assert max_err < 2e-2, f"max abs error {max_err}"

    print("KERNEL_OK")
</pallas_src>

<mosaic_0001>
module attributes {stable_mosaic.version = 11 : i64} {
  func.func @kernel(%arg0: i32, %arg1: memref<8x256xf32, #tpu.memory_space<vmem>>, %arg2: memref<8x9xf32, #tpu.memory_space<vmem>>, %arg3: memref<9x256xf32, #tpu.memory_space<vmem>>, %arg4: memref<32x8xbf16, #tpu.memory_space<vmem>>, %arg5: memref<32x1xf32, #tpu.memory_space<vmem>>, %arg6: memref<16x32xbf16, #tpu.memory_space<vmem>>, %arg7: memref<16x1xf32, #tpu.memory_space<vmem>>, %arg8: memref<16x256xf32, #tpu.memory_space<vmem>>) attributes {dimension_semantics = [#tpu.dimension_semantics<arbitrary>], iteration_bounds = array<i64: 1>, scalar_prefetch = 0 : i64, scratch_operands = 0 : i64, tpu.core_type = #tpu.core_type<tc>, window_params = [{pipeline_mode = #tpu.pipeline_mode<synchronous>, transform_indices = @transform_0, window_bounds = array<i64: 8, 256>}, {pipeline_mode = #tpu.pipeline_mode<synchronous>, transform_indices = @transform_1, window_bounds = array<i64: 8, 9>}, {pipeline_mode = #tpu.pipeline_mode<synchronous>, transform_indices = @transform_2, window_bounds = array<i64: 9, 256>}, {pipeline_mode = #tpu.pipeline_mode<synchronous>, transform_indices = @transform_3, window_bounds = array<i64: 32, 8>}, {pipeline_mode = #tpu.pipeline_mode<synchronous>, transform_indices = @transform_4, window_bounds = array<i64: 32, 1>}, {pipeline_mode = #tpu.pipeline_mode<synchronous>, transform_indices = @transform_5, window_bounds = array<i64: 16, 32>}, {pipeline_mode = #tpu.pipeline_mode<synchronous>, transform_indices = @transform_6, window_bounds = array<i64: 16, 1>}, {pipeline_mode = #tpu.pipeline_mode<synchronous>, transform_indices = @transform_7, window_bounds = array<i64: 16, 256>}]} {
    %c0 = arith.constant 0 : index
    %c0_0 = arith.constant 0 : index
    %0 = vector.load %arg1[%c0, %c0_0] : memref<8x256xf32, #tpu.memory_space<vmem>>, vector<8x256xf32>
    %c0_1 = arith.constant 0 : index
    %c0_2 = arith.constant 0 : index
    %1 = vector.load %arg2[%c0_1, %c0_2] : memref<8x9xf32, #tpu.memory_space<vmem>>, vector<8x9xf32>
    %c0_3 = arith.constant 0 : index
    %c0_4 = arith.constant 0 : index
    %2 = vector.load %arg3[%c0_3, %c0_4] : memref<9x256xf32, #tpu.memory_space<vmem>>, vector<9x256xf32>
    %3 = vector.extract_strided_slice %1 {offsets = [0, 4], sizes = [8, 1], strides = [1, 1]} : vector<8x9xf32> to vector<8x1xf32>
    %4 = vector.broadcast %3 : vector<8x1xf32> to vector<8x256xf32>
    %5 = arith.mulf %0, %4 : vector<8x256xf32>
    %c17_i32 = arith.constant 17 : i32
    %6 = tpu.dynamic_rotate %0 by %c17_i32 dim 1 : vector<8x256xf32>, i32 -> vector<8x256xf32>
    %7 = vector.extract_strided_slice %2 {offsets = [0, 0], sizes = [1, 256], strides = [1, 1]} : vector<9x256xf32> to vector<1x256xf32>
    %8 = vector.broadcast %7 : vector<1x256xf32> to vector<8x256xf32>
    %9 = arith.mulf %6, %8 : vector<8x256xf32>
    %10 = vector.extract_strided_slice %1 {offsets = [0, 0], sizes = [8, 1], strides = [1, 1]} : vector<8x9xf32> to vector<8x1xf32>
    %11 = vector.broadcast %10 : vector<8x1xf32> to vector<8x256xf32>
    %12 = arith.mulf %9, %11 : vector<8x256xf32>
    %13 = arith.addf %5, %12 : vector<8x256xf32>
    %c16_i32 = arith.constant 16 : i32
    %14 = tpu.dynamic_rotate %0 by %c16_i32 dim 1 : vector<8x256xf32>, i32 -> vector<8x256xf32>
    %15 = vector.extract_strided_slice %2 {offsets = [1, 0], sizes = [1, 256], strides = [1, 1]} : vector<9x256xf32> to vector<1x256xf32>
    %16 = vector.broadcast %15 : vector<1x256xf32> to vector<8x256xf32>
    %17 = arith.mulf %14, %16 : vector<8x256xf32>
    %18 = vector.extract_strided_slice %1 {offsets = [0, 1], sizes = [8, 1], strides = [1, 1]} : vector<8x9xf32> to vector<8x1xf32>
    %19 = vector.broadcast %18 : vector<8x1xf32> to vector<8x256xf32>
    %20 = arith.mulf %17, %19 : vector<8x256xf32>
    %21 = arith.addf %13, %20 : vector<8x256xf32>
    %c15_i32 = arith.constant 15 : i32
    %22 = tpu.dynamic_rotate %0 by %c15_i32 dim 1 : vector<8x256xf32>, i32 -> vector<8x256xf32>
    %23 = vector.extract_strided_slice %2 {offsets = [2, 0], sizes = [1, 256], strides = [1, 1]} : vector<9x256xf32> to vector<1x256xf32>
    %24 = vector.broadcast %23 : vector<1x256xf32> to vector<8x256xf32>
    %25 = arith.mulf %22, %24 : vector<8x256xf32>
    %26 = vector.extract_strided_slice %1 {offsets = [0, 2], sizes = [8, 1], strides = [1, 1]} : vector<8x9xf32> to vector<8x1xf32>
    %27 = vector.broadcast %26 : vector<8x1xf32> to vector<8x256xf32>
    %28 = arith.mulf %25, %27 : vector<8x256xf32>
    %29 = arith.addf %21, %28 : vector<8x256xf32>
    %c1_i32 = arith.constant 1 : i32
    %30 = tpu.dynamic_rotate %0 by %c1_i32 dim 1 : vector<8x256xf32>, i32 -> vector<8x256xf32>
    %31 = vector.extract_strided_slice %2 {offsets = [3, 0], sizes = [1, 256], strides = [1, 1]} : vector<9x256xf32> to vector<1x256xf32>
    %32 = vector.broadcast %31 : vector<1x256xf32> to vector<8x256xf32>
    %33 = arith.mulf %30, %32 : vector<8x256xf32>
    %34 = vector.extract_strided_slice %1 {offsets = [0, 3], sizes = [8, 1], strides = [1, 1]} : vector<8x9xf32> to vector<8x1xf32>
    %35 = vector.broadcast %34 : vector<8x1xf32> to vector<8x256xf32>
    %36 = arith.mulf %33, %35 : vector<8x256xf32>
    %37 = arith.addf %29, %36 : vector<8x256xf32>
    %c255_i32 = arith.constant 255 : i32
    %38 = tpu.dynamic_rotate %0 by %c255_i32 dim 1 : vector<8x256xf32>, i32 -> vector<8x256xf32>
    %39 = vector.extract_strided_slice %2 {offsets = [5, 0], sizes = [1, 256], strides = [1, 1]} : vector<9x256xf32> to vector<1x256xf32>
    %40 = vector.broadcast %39 : vector<1x256xf32> to vector<8x256xf32>
    %41 = arith.mulf %38, %40 : vector<8x256xf32>
    %42 = vector.extract_strided_slice %1 {offsets = [0, 5], sizes = [8, 1], strides = [1, 1]} : vector<8x9xf32> to vector<8x1xf32>
    %43 = vector.broadcast %42 : vector<8x1xf32> to vector<8x256xf32>
    %44 = arith.mulf %41, %43 : vector<8x256xf32>
    %45 = arith.addf %37, %44 : vector<8x256xf32>
    %c241_i32 = arith.constant 241 : i32
    %46 = tpu.dynamic_rotate %0 by %c241_i32 dim 1 : vector<8x256xf32>, i32 -> vector<8x256xf32>
    %47 = vector.extract_strided_slice %2 {offsets = [6, 0], sizes = [1, 256], strides = [1, 1]} : vector<9x256xf32> to vector<1x256xf32>
    %48 = vector.broadcast %47 : vector<1x256xf32> to vector<8x256xf32>
    %49 = arith.mulf %46, %48 : vector<8x256xf32>
    %50 = vector.extract_strided_slice %1 {offsets = [0, 6], sizes = [8, 1], strides = [1, 1]} : vector<8x9xf32> to vector<8x1xf32>
    %51 = vector.broadcast %50 : vector<8x1xf32> to vector<8x256xf32>
    %52 = arith.mulf %49, %51 : vector<8x256xf32>
    %53 = arith.addf %45, %52 : vector<8x256xf32>
    %c240_i32 = arith.constant 240 : i32
    %54 = tpu.dynamic_rotate %0 by %c240_i32 dim 1 : vector<8x256xf32>, i32 -> vector<8x256xf32>
    %55 = vector.extract_strided_slice %2 {offsets = [7, 0], sizes = [1, 256], strides = [1, 1]} : vector<9x256xf32> to vector<1x256xf32>
    %56 = vector.broadcast %55 : vector<1x256xf32> to vector<8x256xf32>
    %57 = arith.mulf %54, %56 : vector<8x256xf32>
    %58 = vector.extract_strided_slice %1 {offsets = [0, 7], sizes = [8, 1], strides = [1, 1]} : vector<8x9xf32> to vector<8x1xf32>
    %59 = vector.broadcast %58 : vector<8x1xf32> to vector<8x256xf32>
    %60 = arith.mulf %57, %59 : vector<8x256xf32>
    %61 = arith.addf %53, %60 : vector<8x256xf32>
    %c239_i32 = arith.constant 239 : i32
    %62 = tpu.dynamic_rotate %0 by %c239_i32 dim 1 : vector<8x256xf32>, i32 -> vector<8x256xf32>
    %63 = vector.extract_strided_slice %2 {offsets = [8, 0], sizes = [1, 256], strides = [1, 1]} : vector<9x256xf32> to vector<1x256xf32>
    %64 = vector.broadcast %63 : vector<1x256xf32> to vector<8x256xf32>
    %65 = arith.mulf %62, %64 : vector<8x256xf32>
    %66 = vector.extract_strided_slice %1 {offsets = [0, 8], sizes = [8, 1], strides = [1, 1]} : vector<8x9xf32> to vector<8x1xf32>
    %67 = vector.broadcast %66 : vector<8x1xf32> to vector<8x256xf32>
    %68 = arith.mulf %65, %67 : vector<8x256xf32>
    %69 = arith.addf %61, %68 : vector<8x256xf32>
    %c0_5 = arith.constant 0 : index
    %c0_6 = arith.constant 0 : index
    %70 = vector.load %arg4[%c0_5, %c0_6] : memref<32x8xbf16, #tpu.memory_space<vmem>>, vector<32x8xbf16>
    %71 = arith.truncf %69 : vector<8x256xf32> to vector<8x256xbf16>
    %cst = arith.constant dense<0.000000e+00> : vector<32x256xf32>
    %72 = tpu.matmul %70, %71, %cst {dimension_numbers = #tpu.dot_dimension_numbers<[1], [0], [0], [1], [0, 0, 1, 1], [], []>} : vector<32x8xbf16>, vector<8x256xbf16>, vector<32x256xf32> -> vector<32x256xf32>
    %c0_7 = arith.constant 0 : index
    %c0_8 = arith.constant 0 : index
    %73 = vector.load %arg5[%c0_7, %c0_8] : memref<32x1xf32, #tpu.memory_space<vmem>>, vector<32x1xf32>
    %74 = vector.broadcast %73 : vector<32x1xf32> to vector<32x256xf32>
    %75 = arith.addf %72, %74 : vector<32x256xf32>
    %cst_9 = arith.constant 0.000000e+00 : f32
    %cst_10 = arith.constant 6.000000e+00 : f32
    %76 = vector.broadcast %cst_9 : f32 to vector<32x256xf32>
    %77 = arith.maximumf %76, %75 : vector<32x256xf32>
    %78 = vector.broadcast %cst_10 : f32 to vector<32x256xf32>
    %79 = arith.minimumf %78, %77 : vector<32x256xf32>
    %c0_11 = arith.constant 0 : index
    %c0_12 = arith.constant 0 : index
    %80 = vector.load %arg6[%c0_11, %c0_12] : memref<16x32xbf16, #tpu.memory_space<vmem>>, vector<16x32xbf16>
    %81 = arith.truncf %79 : vector<32x256xf32> to vector<32x256xbf16>
    %cst_13 = arith.constant dense<0.000000e+00> : vector<16x256xf32>
    %82 = tpu.matmul %80, %81, %cst_13 {dimension_numbers = #tpu.dot_dimension_numbers<[1], [0], [0], [1], [0, 0, 1, 1], [], []>} : vector<16x32xbf16>, vector<32x256xbf16>, vector<16x256xf32> -> vector<16x256xf32>
    %c0_14 = arith.constant 0 : index
    %c0_15 = arith.constant 0 : index
    %83 = vector.load %arg7[%c0_14, %c0_15] : memref<16x1xf32, #tpu.memory_space<vmem>>, vector<16x1xf32>
    %84 = vector.broadcast %83 : vector<16x1xf32> to vector<16x256xf32>
    %85 = arith.addf %82, %84 : vector<16x256xf32>
    %86 = math.absf %85 : vector<16x256xf32>
    %cst_16 = arith.constant 0.000000e+00 : f32
    %87 = vector.broadcast %cst_16 : f32 to vector<16x256xf32>
    %88 = arith.subf %87, %86 : vector<16x256xf32>
    %89 = math.exp %88 : vector<16x256xf32>
    %cst_17 = arith.constant 0.000000e+00 : f32
    %90 = vector.broadcast %cst_17 : f32 to vector<16x256xf32>
    %91 = arith.cmpf oge, %85, %90 : vector<16x256xf32>
    %cst_18 = arith.constant 1.000000e+00 : f32
    %92 = vector.broadcast %cst_18 : f32 to vector<16x256xf32>
    %93 = arith.select %91, %92, %89 : vector<16x256xi1>, vector<16x256xf32>
    %cst_19 = arith.constant 1.000000e+00 : f32
    %94 = vector.broadcast %cst_19 : f32 to vector<16x256xf32>
    %95 = arith.addf %94, %89 : vector<16x256xf32>
    %96 = tpu.reciprocal %95 {approx = true} : vector<16x256xf32> -> vector<16x256xf32>
    %97 = arith.mulf %93, %96 : vector<16x256xf32>
    %c0_20 = arith.constant 0 : index
    %c0_21 = arith.constant 0 : index
    %98 = vector.load %arg8[%c0_20, %c0_21] : memref<16x256xf32, #tpu.memory_space<vmem>>, vector<16x256xf32>
    tpu.vector_store %arg8[%c0_20, %c0_21], %97 {strides = array<i32>} : memref<16x256xf32, #tpu.memory_space<vmem>>, vector<16x256xf32>,
    return
  }
  func.func @transform_0(%arg0: i32) -> (i32, i32) {
    %c0_i32 = arith.constant 0 : i32
    %c0_i32_0 = arith.constant 0 : i32
    %c0_i32_1 = arith.constant 0 : i32
    return %c0_i32, %c0_i32_0 : i32, i32
  }
  func.func @transform_1(%arg0: i32) -> (i32, i32) {
    %c0_i32 = arith.constant 0 : i32
    %c0_i32_0 = arith.constant 0 : i32
    %c0_i32_1 = arith.constant 0 : i32
    return %c0_i32, %c0_i32_0 : i32, i32
  }
  func.func @transform_2(%arg0: i32) -> (i32, i32) {
    %c0_i32 = arith.constant 0 : i32
    %c0_i32_0 = arith.constant 0 : i32
    %c0_i32_1 = arith.constant 0 : i32
    return %c0_i32, %c0_i32_0 : i32, i32
  }
  func.func @transform_3(%arg0: i32) -> (i32, i32) {
    %c0_i32 = arith.constant 0 : i32
    %c0_i32_0 = arith.constant 0 : i32
    %c0_i32_1 = arith.constant 0 : i32
    return %c0_i32, %c0_i32_0 : i32, i32
  }
  func.func @transform_4(%arg0: i32) -> (i32, i32) {
    %c0_i32 = arith.constant 0 : i32
    %c0_i32_0 = arith.constant 0 : i32
    %c0_i32_1 = arith.constant 0 : i32
    return %c0_i32, %c0_i32_0 : i32, i32
  }
  func.func @transform_5(%arg0: i32) -> (i32, i32) {
    %c0_i32 = arith.constant 0 : i32
    %c0_i32_0 = arith.constant 0 : i32
    %c0_i32_1 = arith.constant 0 : i32
    return %c0_i32, %c0_i32_0 : i32, i32
  }
  func.func @transform_6(%arg0: i32) -> (i32, i32) {
    %c0_i32 = arith.constant 0 : i32
    %c0_i32_0 = arith.constant 0 : i32
    %c0_i32_1 = arith.constant 0 : i32
    return %c0_i32, %c0_i32_0 : i32, i32
  }
  func.func @transform_7(%arg0: i32) -> (i32, i32) {
    %c0_i32 = arith.constant 0 : i32
    %c0_i32_0 = arith.constant 0 : i32
    %c0_i32_1 = arith.constant 0 : i32
    return %c0_i32, %c0_i32_0 : i32, i32
  }
}

</mosaic_0001>

<bundles_post_ra>
// kernel: tpu_custom_call.1
= control target key start
LH: loop header
LB: loop body
LE: loop exit
PB: predicated region body
PF: predicated region fallthrough
CT: control target
= control target key end

     0   :  { %s513_s28 = smov 16   ;;  %s514_s29 = smov 17   ;;  %v515_v2 = vmov 4   ;;  %v516_v3 = vmov 0   ;;  %s700_s0 = inlined_call_operand.vmem [shape: f32[8,256], index: 0, kind: input, shape index: {}]   ;;  %s701_s1 = inlined_call_operand.vmem [shape: f32[8,9], index: 1, kind: input, shape index: {}]   ;;  %s702_s2 = inlined_call_operand.vmem [shape: f32[9,256], index: 2, kind: input, shape index: {}]   ;;  %s703_s3 = inlined_call_operand.vmem [shape: bf16[32,8], index: 3, kind: input, shape index: {}]   ;;  %s704_s4 = inlined_call_operand.vmem [shape: f32[32,1], index: 4, kind: input, shape index: {}]   ;;  %s705_s5 = inlined_call_operand.vmem [shape: bf16[16,32], index: 5, kind: input, shape index: {}]   ;;  %s706_s6 = inlined_call_operand.vmem [shape: f32[16,1], index: 6, kind: input, shape index: {}]   ;;  %s707_s7 = inlined_call_operand.hbm [shape: f32[16,256], index: 7, kind: output, shape index: {}]  }
   0x1   :  { %v575_v0 = vld [vmem:[%s700_s0] sm:$0xff]  ;;  %457 = vset.pattern.permute.xlu2 %v515_v2  ;;  %466 = vset.pattern.permute.xlu1 %v516_v3 }
   0x2   :  { %v30_v1 = vld [vmem:[%s701_s1] sm:$0xff]  ;;  %63 = vrot.lane.b32.xlu1 %v575_v0, %s513_s28  ;;  %42 = vrot.lane.b32.xlu0 %v575_v0, %s514_s29 }
   0x3   :  { %37 = vperm.xlu2 %457, %v30_v1  }
   0x4   :  { %12 = vsyncpa [#allocation3], 0  ;;  %v586_v4 = vld [vmem:[%s700_s0 + $0x8] sm:$0xff]  ;;  %s517_s1 = smov 15   ;;  %v518_v5 = vmov 1   ;;  %s519_s9 = smov 1   ;;  %v46_v25 = vlaneseq }
   0x5   :  { %v520_v6 = vmov 8   ;;  %v521_v7 = vmov 2   ;;  %s522_s0 = smov 127   ;;  %v523_v8 = vmov 3   ;;  %s524_s10 = smov 113   ;;  %v525_v9 = vmov 5  }
   0x6   :  { %465 = vset.pattern.permute.xlu0 %v520_v6  ;;  %s526_s11 = smov 112   ;;  %v527_v10 = vmov 6   ;;  %s528_s12 = smov 111   ;;  %v529_v11 = vmov 7   ;;  %v609_v26 = vand.u32 127, %v46_v25  ;;  %v614_v29 = vld [vmem:[%s702_s2] sm:$0xff] }
   0x7   :  { %v619_v30 = vld [vmem:[%s702_s2 + $0x8] sm:$0xff]  ;;  %v51_v32 = vperm.slane %v614_v29, 0  ;;  %v70_v38 = vperm.slane %v614_v29, 1  ;;  %v204_v44 = vld [vmem:[%s704_s4 + $0x10] sm:$0xff]  ;;  %v89_v47 = vperm.slane %v614_v29, 2  ;;  %v108_v54 = vperm.slane %v614_v29, 3 }
   0x8   :  { %vm48_vm0 = vcmp.lt.s32.totalorder %v609_v26, 17  ;;  %v52_v33 = vperm.slane %v619_v30, 0  ;;  %vm67_vm1 = vcmp.lt.s32.totalorder %v609_v26, 16  ;;  %vm86_vm2 = vcmp.lt.s32.totalorder %v609_v26, 15  ;;  %s405_s14 = sshll.u32 %s707_s7, 4  ;;  %s531_s15 = smov 256   ;;  %s406_s14 = int_to_ptr.hbm [resolvable:$true] %s405_s14 }
   0x9   :  { %v71_v43 = vperm.slane %v619_v30, 1  ;;  %v90_v48 = vperm.slane %v619_v30, 2  ;;  %vm105_vm3 = vcmp.lt.s32.totalorder %v609_v26, 1  ;;  %v109_v55 = vperm.slane %v619_v30, 3 }
   0xa   :  { %65 = vrot.lane.b32.xlu1 %v586_v4, %s513_s28  ;;  %44 = vrot.lane.b32.xlu0 %v586_v4, %s514_s29  ;;  %vm124_vm4 = vcmp.lt.s32.totalorder %v609_v26, 127  ;;  %v127_v57 = vperm.slane %v614_v29, 5  ;;  %v128_v58 = vperm.slane %v619_v30, 5  ;;  %vm143_vm5 = vcmp.lt.s32.totalorder %v609_v26, 113 }
   0xb   :  { %458 = vset.pattern.permute.xlu2 %v516_v3  ;;  %vm162_vm6 = vcmp.lt.s32.totalorder %v609_v26, 112  ;;  %vm181_vm7 = vcmp.lt.s32.totalorder %v609_v26, 111  ;;  %v203_v26 = vld [vmem:[%s704_s4 + $0x8] sm:$0xff]  ;;  %vm243_vm8 = vcmask 1043456   ;;  %vm236_vm9 = vcmask 64512  }
   0xc   :  { %56 = vperm.xlu2 %458, %v30_v1   ;;  %vm327_vm10 = vcmask 261120  }
  0x12   :  { %84 = vrot.lane.b32.xlu1 %v586_v4, %s517_s1  ;;  %82 = vrot.lane.b32.xlu0 %v575_v0, %s517_s1 }
  0x14   :  { %459 = vset.pattern.permute.xlu2 %v518_v5  ;;  %v202_v5 = vld [vmem:[%s704_s4] sm:$0xff] }
  0x15   :  { %75 = vperm.xlu2 %459, %v30_v1  }
  0x1a   :  { %103 = vrot.lane.b32.xlu1 %v586_v4, %s519_s9  ;;  %101 = vrot.lane.b32.xlu0 %v575_v0, %s519_s9 }
  0x1d   :  { %460 = vset.pattern.permute.xlu2 %v521_v7 }
  0x1e   :  { %94 = vperm.xlu2 %460, %v30_v1  }
  0x22   :  { %122 = vrot.lane.b32.xlu1 %v586_v4, %s522_s0  ;;  %120 = vrot.lane.b32.xlu0 %v575_v0, %s522_s0 }
  0x26   :  { %461 = vset.pattern.permute.xlu2 %v523_v8 }
  0x27   :  { %113 = vperm.xlu2 %461, %v30_v1  }
  0x2a   :  { %141 = vrot.lane.b32.xlu1 %v586_v4, %s524_s10  ;;  %139 = vrot.lane.b32.xlu0 %v575_v0, %s524_s10 }
  0x2f   :  { %462 = vset.pattern.permute.xlu2 %v525_v9 }
  0x30   :  { %132 = vperm.xlu2 %462, %v30_v1  }
  0x32   :  { %160 = vrot.lane.b32.xlu1 %v586_v4, %s526_s11  ;;  %158 = vrot.lane.b32.xlu0 %v575_v0, %s526_s11 }
  0x38   :  { %463 = vset.pattern.permute.xlu2 %v527_v10 }
  0x39   :  { %151 = vperm.xlu2 %463, %v30_v1  }
  0x3a   :  { %179 = vrot.lane.b32.xlu1 %v586_v4, %s528_s12  ;;  %177 = vrot.lane.b32.xlu0 %v575_v0, %s528_s12 }
  0x41   :  { %464 = vset.pattern.permute.xlu2 %v529_v11 }
  0x42   :  { %189 = vperm.xlu0 %465, %v30_v1   ;;  %170 = vperm.xlu2 %464, %v30_v1  }
  0x43   :  { %218 = vperm.xlu1 %466, %v204_v44  }
  0x4a   :  { %468 = vset.pattern.permute.xlu0 %v516_v3  ;;  %467 = vset.pattern.permute.xlu2 %v516_v3  ;;  %v146_v3 = vperm.slane %v614_v29, 6 }
  0x4b   :  { %208 = vperm.xlu1 %466, %v202_v5   ;;  %v436_v5 = vld [vmem:[%s703_s3 + $0x8] sm:$0xff] }
  0x5d   :  { %v38_v12 = vpop.permute.xlu2 %37 }
  0x5e   :  { %v40_v42 = vmul.f32 %v38_v12, %v575_v0  ;;  %v41_v45 = vmul.f32 %v38_v12, %v586_v4  ;;  %v147_v4 = vperm.slane %v619_v30, 6 }
  0x66   :  { %v57_v13 = vpop.permute.xlu2 %56 }
  0x6f   :  { %v603_v16 = vpop.permute.xlu2 %75 }
  0x74   :  { %v64_v14 = vpop.permute.xlu1 %63  ;;  %v43_v15 = vpop.permute.xlu0 %42 }
  0x78   :  { %v605_v21 = vpop.permute.xlu2 %94 }
  0x7c   :  { %v66_v17 = vpop.permute.xlu1 %65  ;;  %v45_v18 = vpop.permute.xlu0 %44 }
  0x7d   :  { %v49_v34 = vsel %vm48_vm0, %v43_v15, %v45_v18  ;;  %v50_v35 = vsel %vm48_vm0, %v45_v18, %v43_v15  ;;  %v69_v39 = vsel %vm67_vm1, %v66_v17, %v64_v14  ;;  %v68_v46 = vsel %vm67_vm1, %v64_v14, %v66_v17 }
  0x7e   :  { %v53_v40 = vmul.f32 %v51_v32, %v50_v35  ;;  %v54_v41 = vmul.f32 %v52_v33, %v49_v34  ;;  %v72_v49 = vmul.f32 %v70_v38, %v69_v39  ;;  %v73_v56 = vmul.f32 %v71_v43, %v68_v46  ;;  %v205_v46 = vld [vmem:[%s704_s4 + $0x18] sm:$0xff] }
  0x7f   :  { %223 = vperm.xlu2 %467, %v205_v46  }
  0x80   :  { %v59_v52 = vmul.f32 %v57_v13, %v53_v40  ;;  %v60_v53 = vmul.f32 %v57_v13, %v54_v41  ;;  %v78_v2 = vmul.f32 %v603_v16, %v72_v49  ;;  %v79_v10 = vmul.f32 %v603_v16, %v73_v56  ;;  %v469_v41 = vld [vmem:[%s702_s2 + $0x10] ss:$0 sm:$0xff] }
  0x81   :  { %v607_v24 = vpop.permute.xlu2 %113 }
  0x82   :  { %v61_v6 = vadd.f32 %v59_v52, %v40_v42  ;;  %v62_v7 = vadd.f32 %v60_v53, %v41_v45  ;;  %v470_v45 = vld [vmem:[%s702_s2 + $0x18] ss:$0 sm:$0xff] }
  0x84   :  { %v85_v19 = vpop.permute.xlu1 %84  ;;  %v83_v20 = vpop.permute.xlu0 %82  ;;  %v81_v25 = vadd.f32 %v79_v10, %v62_v7  ;;  %v310_v10 = vld [vmem:[%s706_s6] sm:$0xff] }
  0x85   :  { %v87_v50 = vsel %vm86_vm2, %v83_v20, %v85_v19  ;;  %v88_v51 = vsel %vm86_vm2, %v85_v19, %v83_v20  ;;  %v165_v20 = vperm.slane %v614_v29, 7  ;;  %314 = vperm.xlu0 %468, %v310_v10  }
  0x86   :  { %v91_v60 = vmul.f32 %v89_v47, %v88_v51  ;;  %v92_v61 = vmul.f32 %v90_v48, %v87_v50 }
  0x87   :  { %213 = vperm.xlu2 %467, %v203_v26  }
  0x88   :  { %v97_v13 = vmul.f32 %v605_v21, %v91_v60  ;;  %v98_v14 = vmul.f32 %v605_v21, %v92_v61 }
  0x8a   :  { %v622_v31 = vpop.permute.xlu2 %132  ;;  %v100_v35 = vadd.f32 %v98_v14, %v81_v25 }
  0x8c   :  { %v104_v22 = vpop.permute.xlu1 %103  ;;  %v102_v23 = vpop.permute.xlu0 %101 }
  0x8d   :  { %v106_v62 = vsel %vm105_vm3, %v102_v23, %v104_v22  ;;  %v107_v63 = vsel %vm105_vm3, %v104_v22, %v102_v23  ;;  %v166_v22 = vperm.slane %v619_v30, 7  ;;  %v80_v23 = vadd.f32 %v78_v2, %v61_v6 }
  0x8e   :  { %v110_v11 = vmul.f32 %v108_v54, %v107_v63  ;;  %v111_v12 = vmul.f32 %v109_v55, %v106_v62 }
  0x8f   :  { %v99_v21 = vadd.f32 %v97_v13, %v80_v23 }
  0x90   :  { %v117_v32 = vmul.f32 %v607_v24, %v111_v12 }
  0x92   :  { %v119_v42 = vadd.f32 %v117_v32, %v100_v35 }
  0x93   :  { %v152_v59 = vpop.permute.xlu2 %151 }
  0x94   :  { %v123_v27 = vpop.permute.xlu1 %122  ;;  %v121_v28 = vpop.permute.xlu0 %120 }
  0x95   :  { %v125_v8 = vsel %vm124_vm4, %v121_v28, %v123_v27  ;;  %v126_v9 = vsel %vm124_vm4, %v123_v27, %v121_v28  ;;  %v116_v28 = vmul.f32 %v607_v24, %v110_v11 }
  0x96   :  { %v129_v18 = vmul.f32 %v127_v57, %v125_v8  ;;  %v130_v19 = vmul.f32 %v128_v58, %v126_v9 }
  0x97   :  { %v118_v24 = vadd.f32 %v116_v28, %v99_v21 }
  0x98   :  { %v136_v29 = vmul.f32 %v622_v31, %v130_v19 }
  0x9a   :  { %v138_v50 = vadd.f32 %v136_v29, %v119_v42 }
  0x9c   :  { %v142_v36 = vpop.permute.xlu1 %141  ;;  %v140_v37 = vpop.permute.xlu0 %139 }
  0x9d   :  { %v144_v15 = vsel %vm143_vm5, %v140_v37, %v142_v36  ;;  %v145_v17 = vsel %vm143_vm5, %v142_v36, %v140_v37  ;;  %v135_v37 = vmul.f32 %v622_v31, %v129_v18  ;;  %v171_v40 = vpop.permute.xlu2 %170  ;;  %v311_v31 = vld [vmem:[%s706_s6 + $0x8] sm:$0xff] }
  0x9e   :  { %v148_v33 = vmul.f32 %v146_v3, %v144_v15  ;;  %v149_v34 = vmul.f32 %v147_v4, %v145_v17  ;;  %319 = vperm.xlu1 %466, %v311_v31   ;;  %v435_v4 = vld [vmem:[%s703_s3] sm:$0xff] }
  0x9f   :  { %v137_v49 = vadd.f32 %v135_v37, %v118_v24 }
  0xa0   :  { %v154_v43 = vmul.f32 %v152_v59, %v148_v33  ;;  %v155_v44 = vmul.f32 %v152_v59, %v149_v34 }
  0xa2   :  { %v156_v53 = vadd.f32 %v154_v43, %v137_v49  ;;  %v157_v54 = vadd.f32 %v155_v44, %v138_v50 }
  0xa4   :  { %v161_v0 = vpop.permute.xlu1 %160  ;;  %v159_v1 = vpop.permute.xlu0 %158 }
  0xa5   :  { %v163_v16 = vsel %vm162_vm6, %v159_v1, %v161_v0  ;;  %v164_v27 = vsel %vm162_vm6, %v161_v0, %v159_v1 }
  0xa6   :  { %v167_v30 = vmul.f32 %v165_v20, %v163_v16  ;;  %v168_v38 = vmul.f32 %v166_v22, %v164_v27 }
  0xa8   :  { %v173_v51 = vmul.f32 %v171_v40, %v167_v30  ;;  %v174_v52 = vmul.f32 %v171_v40, %v168_v38 }
  0xaa   :  { %v175_v58 = vadd.f32 %v173_v51, %v156_v53  ;;  %v176_v59 = vadd.f32 %v174_v52, %v157_v54 }
  0xac   :  { %v178_v36 = vpop.permute.xlu0 %177  ;;  %v180_v39 = vpop.permute.xlu1 %179 }
  0xad   :  { %v182_v47 = vsel %vm181_vm7, %v178_v36, %v180_v39  ;;  %v183_v48 = vsel %vm181_vm7, %v180_v39, %v178_v36 }
  0xae   :  { %v186_v55 = vmul.f32 %v469_v41, %v182_v47  ;;  %v187_v56 = vmul.f32 %v470_v45, %v183_v48  ;;  %v437_v48 = vld [vmem:[%s705_s5] sm:$0xff]  ;;  %s530_s5 = smov [#allocation2]  }
  0xaf   :  { %s403_s11 = sshll.u32 %s530_s5, 4  ;;  %s404_s11 = int_to_ptr.vmem [resolvable:$true] %s403_s11 }
  0xb4   :  { %v190_v57 = vpop.permute.xlu0 %189 }
  0xb5   :  { %v192_v60 = vmul.f32 %v190_v57, %v186_v55  ;;  %v193_v61 = vmul.f32 %v190_v57, %v187_v56  ;;  %v219_v12 = vpop.permute.xlu1 %218 }
  0xb7   :  { %v194_v62 = vadd.f32 %v192_v60, %v175_v58  ;;  %v195_v63 = vadd.f32 %v193_v61, %v176_v59 }
  0xb9   :  { %v200_v0 = vpack.c.bf16 %v194_v62, %v194_v62  ;;  %v201_v1 = vpack.c.bf16 %v195_v63, %v195_v63 }
  0xbb   :  { %v245_v2 = vsel %vm243_vm8, %v200_v0, 0  ;;  %v248_v3 = vsel %vm243_vm8, %v201_v1, 0 }
  0xbc   :  { %257 = vmatpush.bf16.msra.mxu0 %v245_v2  ;;  %276 = vmatpush.bf16.msra.mxu1 %v248_v3 }
  0xbd   :  { %v209_v17 = vpop.permute.xlu1 %208 }
  0xbf   :  { %425 = vmatmul.msk.bf16.vlgmr.msra.gmra.mxu0 %vm236_vm9, %v435_v4  ;;  %427 = vmatmul.msk.bf16.vlgmr.msra.gmra.mxu1 %vm236_vm9, %v435_v4 }
  0xcf   :  { %426 = vmatmul.msk.bf16.gmra.mxu0 %vm236_vm9, %v436_v5  ;;  %428 = vmatmul.msk.bf16.gmra.mxu1 %vm236_vm9, %v436_v5 }
  0xd9   :  { %v224_v11 = vpop.permute.xlu2 %223 }
  0xe1   :  { %v214_v15 = vpop.permute.xlu2 %213 }
  0xf7   :  { %v315_v49 = vpop.permute.xlu0 %314 }
 0x110   :  { %v320_v58 = vpop.permute.xlu1 %319 }
 0x13c   :  { %v259_v6 = vpop.f32.mrf.mxu0  ;;  %v278_v7 = vpop.f32.mrf.mxu1 }
 0x13d   :  { %v260_v23 = vadd.f32 %v259_v6, %v209_v17  ;;  %v279_v25 = vadd.f32 %v278_v7, %v209_v17 }
 0x13f   :  { %v288_v29 = vmax.f32 %v260_v23, 0.0  ;;  %v289_v30 = vmax.f32 %v279_v25, 0.0 }
 0x141   :  { %v296_v45 = vmin.f32 %v288_v29, 6.0  ;;  %v297_v31 = vmin.f32 %v289_v30, 6.0 }
 0x144   :  { %v261_v8 = vpop.f32.mrf.mxu0  ;;  %v280_v9 = vpop.f32.mrf.mxu1 }
 0x145   :  { %v262_v20 = vadd.f32 %v261_v8, %v214_v15  ;;  %v281_v22 = vadd.f32 %v280_v9, %v214_v15 }
 0x147   :  { %v290_v21 = vmax.f32 %v262_v20, 0.0  ;;  %v291_v35 = vmax.f32 %v281_v22, 0.0 }
 0x149   :  { %v298_v24 = vmin.f32 %v290_v21, 6.0  ;;  %v299_v42 = vmin.f32 %v291_v35, 6.0 }
 0x14b   :  { %v306_v46 = vpack.c.bf16 %v298_v24, %v296_v45  ;;  %v307_v47 = vpack.c.bf16 %v299_v42, %v297_v31 }
 0x14c   :  { %v264_v13 = vpop.f32.mrf.mxu0  ;;  %v283_v14 = vpop.f32.mrf.mxu1 }
 0x14d   :  { %v265_v18 = vadd.f32 %v264_v13, %v219_v12  ;;  %v284_v19 = vadd.f32 %v283_v14, %v219_v12 }
 0x14f   :  { %v292_v28 = vmax.f32 %v265_v18, 0.0  ;;  %v293_v32 = vmax.f32 %v284_v19, 0.0 }
 0x151   :  { %v300_v38 = vmin.f32 %v292_v28, 6.0  ;;  %v301_v39 = vmin.f32 %v293_v32, 6.0 }
 0x154   :  { %v266_v16 = vpop.f32.mrf.mxu0  ;;  %v285_v27 = vpop.f32.mrf.mxu1 }
 0x155   :  { %v267_v33 = vadd.f32 %v266_v16, %v224_v11  ;;  %v286_v34 = vadd.f32 %v285_v27, %v224_v11 }
 0x157   :  { %v294_v36 = vmax.f32 %v267_v33, 0.0  ;;  %v295_v37 = vmax.f32 %v286_v34, 0.0 }
 0x159   :  { %v302_v40 = vmin.f32 %v294_v36, 6.0  ;;  %v303_v41 = vmin.f32 %v295_v37, 6.0 }
 0x15b   :  { %v308_v43 = vpack.c.bf16 %v302_v40, %v300_v38  ;;  %v309_v44 = vpack.c.bf16 %v303_v41, %v301_v39 }
 0x15d   :  { %337 = vmatpush.bf16.msra.mxu2 %v308_v43  ;;  %351 = vmatpush.bf16.msra.mxu3 %v309_v44 }
 0x161   :  { %338 = vmatpush.bf16.msra.mxu2 %v306_v46  ;;  %352 = vmatpush.bf16.msra.mxu3 %v307_v47 }
 0x164   :  { %433 = vmatmul.msk.bf16.vlgmr.msra.gmra.mxu2 %vm327_vm10, %v437_v48  ;;  %434 = vmatmul.msk.bf16.vlgmr.msra.gmra.mxu3 %vm327_vm10, %v437_v48 }
 0x1e7   :  { %v354_v50 = vpop.f32.mrf.mxu3  ;;  %v340_v51 = vpop.f32.mrf.mxu2 }
 0x1e8   :  { %v355_v52 = vadd.f32 %v354_v50, %v315_v49  ;;  %v341_v53 = vadd.f32 %v340_v51, %v315_v49 }
 0x1ea   :  { %v360_v54 = vand.u32 2147483647, %v355_v52  ;;  %v359_v55 = vand.u32 2147483647, %v341_v53  ;;  %vm376_vm11 = vcmp.ge.f32.partialorder %v355_v52, 0.0  ;;  %vm375_vm12 = vcmp.ge.f32.partialorder %v341_v53, 0.0 }
 0x1ec   :  { %v364_v56 = vsub.f32 0.0, %v360_v54  ;;  %v363_v57 = vsub.f32 0.0, %v359_v55 }
 0x1ee   :  { %v369_v59 = vmul.f32 1.442695, %v364_v56  ;;  %v367_v60 = vmul.f32 1.442695, %v363_v57 }
 0x1ef   :  { %v342_v61 = vpop.f32.mrf.mxu2  ;;  %v356_v26 = vpop.f32.mrf.mxu3 }
 0x1f0   :  { %471 = vpow2.f32 %v369_v59  ;;  %v343_v62 = vadd.f32 %v342_v61, %v320_v58  ;;  %v357_v63 = vadd.f32 %v356_v26, %v320_v58 }
 0x1f1   :  { %473 = vpow2.f32 %v367_v60 }
 0x1f2   :  { %v361_v0 = vand.u32 2147483647, %v343_v62  ;;  %v362_v1 = vand.u32 2147483647, %v357_v63  ;;  %vm377_vm13 = vcmp.ge.f32.partialorder %v343_v62, 0.0  ;;  %vm378_vm14 = vcmp.ge.f32.partialorder %v357_v63, 0.0 }
 0x1f4   :  { %v365_v2 = vsub.f32 0.0, %v361_v0  ;;  %v366_v3 = vsub.f32 0.0, %v362_v1 }
 0x1f6   :  { %v472_v4 = vpop.eup %471  ;;  %v371_v5 = vmul.f32 1.442695, %v365_v2  ;;  %v373_v8 = vmul.f32 1.442695, %v366_v3 }
 0x1f7   :  { %v474_v6 = vpop.eup %473  ;;  %v384_v7 = vadd.f32 1.0, %v472_v4  ;;  %v380_v12 = vsel %vm376_vm11, 1.0, %v472_v4 }
 0x1f8   :  { %v383_v9 = vadd.f32 1.0, %v474_v6  ;;  %475 = vpow2.f32 %v371_v5  ;;  %v379_v17 = vsel %vm375_vm12, 1.0, %v474_v6 }
 0x1f9   :  { %477 = vrcp.f32 %v384_v7 }
 0x1fa   :  { %479 = vrcp.f32 %v383_v9 }
 0x1fb   :  { %481 = vpow2.f32 %v373_v8 }
 0x1fe   :  { %v476_v10 = vpop.eup %475 }
 0x1ff   :  { %v478_v11 = vpop.eup %477  ;;  %v385_v13 = vadd.f32 1.0, %v476_v10  ;;  %v381_v23 = vsel %vm377_vm13, 1.0, %v476_v10 }
 0x200   :  { %v480_v14 = vpop.eup %479  ;;  %v392_v15 = vmul.f32 %v478_v11, %v380_v12 }
 0x201   :  { %v482_v18 = vpop.eup %481  ;;  %v391_v19 = vmul.f32 %v480_v14, %v379_v17  ;;  %483 = vrcp.f32 %v385_v13 }
 0x202   :  { %396 = vst [vmem:[#allocation2 + $0x8] sm:$0xff] %v392_v15  ;;  %v386_v20 = vadd.f32 1.0, %v482_v18  ;;  %v382_v27 = vsel %vm378_vm14, 1.0, %v482_v18 }
 0x203   :  { %395 = vst [vmem:[#allocation2] sm:$0xff] %v391_v19 }
 0x204   :  { %485 = vrcp.f32 %v386_v20 }
 0x207   :  { %v484_v22 = vpop.eup %483 }
 0x208   :  { %v393_v25 = vmul.f32 %v484_v22, %v381_v23 }
 0x20a   :  { %v486_v16 = vpop.eup %485  ;;  %397 = vst [vmem:[#allocation2 + $0x10] sm:$0xff] %v393_v25 }
 0x20b   :  { %v394_v28 = vmul.f32 %v486_v16, %v382_v27 }
 0x20d   :  { %398 = vst [vmem:[#allocation2 + $0x18] sm:$0xff] %v394_v28 }
 0x20e   :  { %411 = dma.vmem_to_hbm [thread:$0]  %s404_s11, 512, %s406_s14, [#allocation3], %s531_s15, %s531_s15, %s513_s28  }
 0x20f   :  { %511 = dma.done.wait [#allocation3], 512  }
 0x210   :  { %512 = vsyncadd [#allocation3], 4294966784 }
 0x211   :  { %416 = vsyncpa [#allocation3], 1 }

</bundles_post_ra>
